<compile_context>
chip_gen: v5e
topology: v5e:2x2
jax: 0.10.0
libtpu: 0.0.40
codegen_flags: <defaults>
</compile_context>

<pallas_src>
import jax
import jax.numpy as jnp
from jax.experimental import pallas as pl
from jax.experimental.pallas import tpu as pltpu


def _round_up(a, b):
    return (a + b - 1) // b * b


def _cdiv(a, b):
    return (a + b - 1) // b


def _pick_tm(batch, tm_request):
    """Batch tile: multiple of 8, <= tm_request, <= ~10% padding waste, and >= 2 grid
    steps whenever the batch is splittable (v7x megacore shards the parallel axis)."""
    b8 = _round_up(batch, 8)
    tm = max(8, min(tm_request, b8))
    if b8 >= 16:
        tm = min(tm, _round_up(_cdiv(b8, 2), 8))
    # Extra grid steps only cost ~0.35 us each; padding waste costs DMA + MXU work.
    while tm > 8 and _round_up(batch, tm) * 10 > batch * 11:
        tm -= 8
    return tm


def _mlp_kernel(x_ref, w1_ref, b1_ref, w2_ref, b2_ref, w3_ref, b3_ref, o_ref):
    # x_ref: (tm, Din_p) bf16 | w*: bf16 (per-layer padded) | b*: (1, N) f32
    # o_ref: (tm, Dout_p) bf16 lane-dense store
    x = x_ref[...]

    # fc1 + ReLU: bf16 MXU operands, f32 accumulation, f32 elementwise (v5e-safe).
    h1 = jnp.dot(x, w1_ref[...], preferred_element_type=jnp.float32) + b1_ref[...]
    h1 = jnp.maximum(h1, 0.0)

    # fc2 + ReLU
    h2 = jnp.dot(h1.astype(jnp.bfloat16), w2_ref[...],
                 preferred_element_type=jnp.float32) + b2_ref[...]
    h2 = jnp.maximum(h2, 0.0)

    # fc3 + Sigmoid; padded output lanes hold sigmoid(0)=0.5 and are sliced off
    # wrapper-side.  Narrow bf16 store halves the dominant HBM writeback stream.
    h3 = jnp.dot(h2.astype(jnp.bfloat16), w3_ref[...],
                 preferred_element_type=jnp.float32) + b3_ref[...]
    o_ref[...] = jax.nn.sigmoid(h3).astype(o_ref.dtype)


_SINGLE_BUFFER_WEIGHTS = None  # resolved on first call: does pl.Buffered(1) lower?


def _invariant_spec(shape, single_buffer):
    """Full-array, grid-invariant block (weights / biases)."""
    if single_buffer:
        # These blocks never change across grid steps -> one VMEM buffer is enough,
        # halving the resident-weight footprint (matters on v7x's 64 MiB VMEM).
        return pl.BlockSpec(shape, lambda i: (0, 0), pipeline_mode=pl.Buffered(1))
    return pl.BlockSpec(shape, lambda i: (0, 0))


def enhanced_trajectory_model(x, params, *, tm=512):
    """x: (B, input_dim) f32.  params: w1,b1,w2,b2,w3,b3 with weights stored (in, out)."""
    w1, b1 = params["w1"], params["b1"]
    w2, b2 = params["w2"], params["b2"]
    w3, b3 = params["w3"], params["b3"]

    B, input_dim = x.shape
    hidden_dim = w1.shape[1]
    output_dim = w3.shape[1]

    # Per-layer padding: fc1 K dim only needs bf16 sublane (16) alignment; hidden and
    # output dims get their own lane-dense 128-multiples.
    din_p = _round_up(input_dim, 16)
    h_p = _round_up(hidden_dim, 128)
    dout_p = _round_up(output_dim, 128)

    tm = _pick_tm(B, tm)
    b_pad = _round_up(B, tm)

    def pad2(a, rows, cols, dtype):
        a = jnp.asarray(a)
        buf = jnp.zeros((rows, cols), dtype)
        return buf.at[: a.shape[0], : a.shape[1]].set(a.astype(dtype))

    w1p = pad2(w1, din_p, h_p, jnp.bfloat16)
    w2p = pad2(w2, h_p, h_p, jnp.bfloat16)
    w3p = pad2(w3, h_p, dout_p, jnp.bfloat16)
    b1p = pad2(jnp.asarray(b1).reshape(1, -1), 1, h_p, jnp.float32)
    b2p = pad2(jnp.asarray(b2).reshape(1, -1), 1, h_p, jnp.float32)
    b3p = pad2(jnp.asarray(b3).reshape(1, -1), 1, dout_p, jnp.float32)
    x_p = pad2(x, b_pad, din_p, jnp.bfloat16)        # bf16 halves the x DMA bytes

    # Explicit VMEM budget: worst case (double-buffered weights) + pipelined x/out tiles.
    weight_bytes = (din_p * h_p + h_p * h_p + h_p * dout_p) * 2
    bias_bytes = 3 * 8 * max(h_p, dout_p) * 4
    tile_bytes = 2 * tm * (din_p + dout_p) * 2
    budget = 2 * weight_bytes + bias_bytes + tile_bytes
    vmem_limit = int(min(max(2 * budget, 16 << 20), 100 << 20))

    cost = pl.CostEstimate(
        flops=2 * b_pad * (din_p * h_p + h_p * h_p + h_p * dout_p),
        transcendentals=b_pad * dout_p,
        bytes_accessed=(b_pad * din_p * 2 + weight_bytes + bias_bytes
                        + b_pad * dout_p * 2),
    )

    def run(single_buffer):
        return pl.pallas_call(
            _mlp_kernel,
            out_shape=jax.ShapeDtypeStruct((b_pad, dout_p), jnp.bfloat16),
            grid=(b_pad // tm,),
            in_specs=[
                pl.BlockSpec((tm, din_p), lambda i: (i, 0)),   # pipelined x tile
                _invariant_spec((din_p, h_p), single_buffer),  # resident weights/biases
                _invariant_spec((1, h_p), single_buffer),
                _invariant_spec((h_p, h_p), single_buffer),
                _invariant_spec((1, h_p), single_buffer),
                _invariant_spec((h_p, dout_p), single_buffer),
                _invariant_spec((1, dout_p), single_buffer),
            ],
            out_specs=pl.BlockSpec((tm, dout_p), lambda i: (i, 0)),  # narrow bf16 out
            compiler_params=pltpu.CompilerParams(
                dimension_semantics=("parallel",),             # megacore shard on v7x
                vmem_limit_bytes=vmem_limit),
            cost_estimate=cost,
        )(x_p, w1p, b1p, w2p, b2p, w3p, b3p)

    global _SINGLE_BUFFER_WEIGHTS
    modes = ((True, False) if _SINGLE_BUFFER_WEIGHTS is None
             else (_SINGLE_BUFFER_WEIGHTS,))
    out = None
    for n, mode in enumerate(modes):
        try:
            out = run(mode)
            if len(modes) > 1:
                jax.block_until_ready(out)   # surface lowering/runtime errors now
        except Exception:
            if n == len(modes) - 1:
                raise
            continue
        _SINGLE_BUFFER_WEIGHTS = mode
        break

    return out[:B, :output_dim].astype(jnp.float32)


def init_params(key, input_dim, hidden_dim, output_dim):
    """Deterministic init mimicking PyTorch nn.Linear: U(-1/sqrt(fan_in), 1/sqrt(fan_in))."""
    ks = jax.random.split(key, 6)

    def linear(kw, kb, fan_in, fan_out):
        bound = 1.0 / jnp.sqrt(fan_in)
        w = jax.random.uniform(kw, (fan_in, fan_out), jnp.float32, -bound, bound)
        b = jax.random.uniform(kb, (1, fan_out), jnp.float32, -bound, bound)
        return w, b

    w1, b1 = linear(ks[0], ks[1], input_dim, hidden_dim)
    w2, b2 = linear(ks[2], ks[3], hidden_dim, hidden_dim)
    w3, b3 = linear(ks[4], ks[5], hidden_dim, output_dim)
    return {"w1": w1, "b1": b1, "w2": w2, "b2": b2, "w3": w3, "b3": b3}


def reference_forward(x, p):
    h = jnp.maximum(x @ p["w1"] + p["b1"], 0.0)
    h = jnp.maximum(h @ p["w2"] + p["b2"], 0.0)
    return jax.nn.sigmoid(h @ p["w3"] + p["b3"])


if __name__ == "__main__":
    input_dim, hidden_dim, output_dim = 16, 32, 8
    batch = 8

    key = jax.random.PRNGKey(0)
    k_x, k_p, k_x2 = jax.random.split(key, 3)
    x = jax.random.normal(k_x, (batch, input_dim), jnp.float32)
    params = init_params(k_p, input_dim, hidden_dim, output_dim)

    # Small-batch path (single grid step).
    out = jax.block_until_ready(enhanced_trajectory_model(x, params))
    ref = reference_forward(x, params)
    assert out.shape == (batch, output_dim)
    # bf16 matmul operands / bf16 output store with f32 accumulation -> loose tolerance.
    assert jnp.allclose(out, ref, atol=2e-2, rtol=2e-2), "mismatch vs reference (small batch)"

    # Multi-step grid + adaptive tile + batch-padding path (B not a multiple of tm).
    x_big = jax.random.normal(k_x2, (300, input_dim), jnp.float32)
    out_big = jax.block_until_ready(enhanced_trajectory_model(x_big, params, tm=512))
    ref_big = reference_forward(x_big, params)
    assert out_big.shape == (300, output_dim)
    assert jnp.allclose(out_big, ref_big, atol=2e-2, rtol=2e-2), "mismatch vs reference (big batch)"

    print("KERNEL_OK")
</pallas_src>

<mosaic_0001>
module attributes {stable_mosaic.version = 11 : i64} {
  func.func @_mlp_kernel(%arg0: i32, %arg1: memref<8x16xbf16, #tpu.memory_space<vmem>>, %arg2: memref<16x128xbf16, #tpu.memory_space<vmem>>, %arg3: memref<1x128xf32, #tpu.memory_space<vmem>>, %arg4: memref<128x128xbf16, #tpu.memory_space<vmem>>, %arg5: memref<1x128xf32, #tpu.memory_space<vmem>>, %arg6: memref<128x128xbf16, #tpu.memory_space<vmem>>, %arg7: memref<1x128xf32, #tpu.memory_space<vmem>>, %arg8: memref<8x128xbf16, #tpu.memory_space<vmem>>) attributes {dimension_semantics = [#tpu.dimension_semantics<parallel>], iteration_bounds = array<i64: 1>, scalar_prefetch = 0 : i64, scratch_operands = 0 : i64, tpu.core_type = #tpu.core_type<tc>, window_params = [{transform_indices = @transform_0, window_bounds = array<i64: 8, 16>}, {pipeline_mode = #tpu.pipeline_mode<synchronous>, transform_indices = @transform_1, window_bounds = array<i64: 16, 128>}, {pipeline_mode = #tpu.pipeline_mode<synchronous>, transform_indices = @transform_2, window_bounds = array<i64: 1, 128>}, {pipeline_mode = #tpu.pipeline_mode<synchronous>, transform_indices = @transform_3, window_bounds = array<i64: 128, 128>}, {pipeline_mode = #tpu.pipeline_mode<synchronous>, transform_indices = @transform_4, window_bounds = array<i64: 1, 128>}, {pipeline_mode = #tpu.pipeline_mode<synchronous>, transform_indices = @transform_5, window_bounds = array<i64: 128, 128>}, {pipeline_mode = #tpu.pipeline_mode<synchronous>, transform_indices = @transform_6, window_bounds = array<i64: 1, 128>}, {transform_indices = @transform_7, window_bounds = array<i64: 8, 128>}]} {
    %c0 = arith.constant 0 : index
    %c0_0 = arith.constant 0 : index
    %0 = vector.load %arg1[%c0, %c0_0] : memref<8x16xbf16, #tpu.memory_space<vmem>>, vector<8x16xbf16>
    %c0_1 = arith.constant 0 : index
    %c0_2 = arith.constant 0 : index
    %1 = vector.load %arg2[%c0_1, %c0_2] : memref<16x128xbf16, #tpu.memory_space<vmem>>, vector<16x128xbf16>
    %cst = arith.constant dense<0.000000e+00> : vector<8x128xf32>
    %2 = tpu.matmul %0, %1, %cst {dimension_numbers = #tpu.dot_dimension_numbers<[1], [0], [0], [1], [0, 0, 1, 1], [], []>} : vector<8x16xbf16>, vector<16x128xbf16>, vector<8x128xf32> -> vector<8x128xf32>
    %c0_3 = arith.constant 0 : index
    %c0_4 = arith.constant 0 : index
    %3 = vector.load %arg3[%c0_3, %c0_4] : memref<1x128xf32, #tpu.memory_space<vmem>>, vector<1x128xf32>
    %4 = vector.broadcast %3 : vector<1x128xf32> to vector<8x128xf32>
    %5 = arith.addf %2, %4 : vector<8x128xf32>
    %cst_5 = arith.constant 0.000000e+00 : f32
    %6 = vector.broadcast %cst_5 : f32 to vector<8x128xf32>
    %7 = arith.maximumf %5, %6 : vector<8x128xf32>
    %8 = arith.truncf %7 : vector<8x128xf32> to vector<8x128xbf16>
    %c0_6 = arith.constant 0 : index
    %c0_7 = arith.constant 0 : index
    %9 = vector.load %arg4[%c0_6, %c0_7] : memref<128x128xbf16, #tpu.memory_space<vmem>>, vector<128x128xbf16>
    %cst_8 = arith.constant dense<0.000000e+00> : vector<8x128xf32>
    %10 = tpu.matmul %8, %9, %cst_8 {dimension_numbers = #tpu.dot_dimension_numbers<[1], [0], [0], [1], [0, 0, 1, 1], [], []>} : vector<8x128xbf16>, vector<128x128xbf16>, vector<8x128xf32> -> vector<8x128xf32>
    %c0_9 = arith.constant 0 : index
    %c0_10 = arith.constant 0 : index
    %11 = vector.load %arg5[%c0_9, %c0_10] : memref<1x128xf32, #tpu.memory_space<vmem>>, vector<1x128xf32>
    %12 = vector.broadcast %11 : vector<1x128xf32> to vector<8x128xf32>
    %13 = arith.addf %10, %12 : vector<8x128xf32>
    %cst_11 = arith.constant 0.000000e+00 : f32
    %14 = vector.broadcast %cst_11 : f32 to vector<8x128xf32>
    %15 = arith.maximumf %13, %14 : vector<8x128xf32>
    %16 = arith.truncf %15 : vector<8x128xf32> to vector<8x128xbf16>
    %c0_12 = arith.constant 0 : index
    %c0_13 = arith.constant 0 : index
    %17 = vector.load %arg6[%c0_12, %c0_13] : memref<128x128xbf16, #tpu.memory_space<vmem>>, vector<128x128xbf16>
    %cst_14 = arith.constant dense<0.000000e+00> : vector<8x128xf32>
    %18 = tpu.matmul %16, %17, %cst_14 {dimension_numbers = #tpu.dot_dimension_numbers<[1], [0], [0], [1], [0, 0, 1, 1], [], []>} : vector<8x128xbf16>, vector<128x128xbf16>, vector<8x128xf32> -> vector<8x128xf32>
    %c0_15 = arith.constant 0 : index
    %c0_16 = arith.constant 0 : index
    %19 = vector.load %arg7[%c0_15, %c0_16] : memref<1x128xf32, #tpu.memory_space<vmem>>, vector<1x128xf32>
    %20 = vector.broadcast %19 : vector<1x128xf32> to vector<8x128xf32>
    %21 = arith.addf %18, %20 : vector<8x128xf32>
    %22 = arith.negf %21 : vector<8x128xf32>
    %23 = math.exp %22 : vector<8x128xf32>
    %cst_17 = arith.constant 1.000000e+00 : f32
    %24 = vector.broadcast %cst_17 : f32 to vector<8x128xf32>
    %25 = arith.addf %24, %23 : vector<8x128xf32>
    %26 = arith.divf %24, %25 : vector<8x128xf32>
    %27 = arith.truncf %26 : vector<8x128xf32> to vector<8x128xbf16>
    %c0_18 = arith.constant 0 : index
    %c0_19 = arith.constant 0 : index
    %28 = vector.load %arg8[%c0_18, %c0_19] : memref<8x128xbf16, #tpu.memory_space<vmem>>, vector<8x128xbf16>
    tpu.vector_store %arg8[%c0_18, %c0_19], %27 {strides = array<i32>} : memref<8x128xbf16, #tpu.memory_space<vmem>>, vector<8x128xbf16>,
    return
  }
  func.func @transform_0(%arg0: i32) -> (i32, i32) {
    %c0_i32 = arith.constant 0 : i32
    %c0_i32_0 = arith.constant 0 : i32
    return %arg0, %c0_i32 : i32, i32
  }
  func.func @transform_1(%arg0: i32) -> (i32, i32) {
    %c0_i32 = arith.constant 0 : i32
    %c0_i32_0 = arith.constant 0 : i32
    %c0_i32_1 = arith.constant 0 : i32
    return %c0_i32, %c0_i32_0 : i32, i32
  }
  func.func @transform_2(%arg0: i32) -> (i32, i32) {
    %c0_i32 = arith.constant 0 : i32
    %c0_i32_0 = arith.constant 0 : i32
    %c0_i32_1 = arith.constant 0 : i32
    return %c0_i32, %c0_i32_0 : i32, i32
  }
  func.func @transform_3(%arg0: i32) -> (i32, i32) {
    %c0_i32 = arith.constant 0 : i32
    %c0_i32_0 = arith.constant 0 : i32
    %c0_i32_1 = arith.constant 0 : i32
    return %c0_i32, %c0_i32_0 : i32, i32
  }
  func.func @transform_4(%arg0: i32) -> (i32, i32) {
    %c0_i32 = arith.constant 0 : i32
    %c0_i32_0 = arith.constant 0 : i32
    %c0_i32_1 = arith.constant 0 : i32
    return %c0_i32, %c0_i32_0 : i32, i32
  }
  func.func @transform_5(%arg0: i32) -> (i32, i32) {
    %c0_i32 = arith.constant 0 : i32
    %c0_i32_0 = arith.constant 0 : i32
    %c0_i32_1 = arith.constant 0 : i32
    return %c0_i32, %c0_i32_0 : i32, i32
  }
  func.func @transform_6(%arg0: i32) -> (i32, i32) {
    %c0_i32 = arith.constant 0 : i32
    %c0_i32_0 = arith.constant 0 : i32
    %c0_i32_1 = arith.constant 0 : i32
    return %c0_i32, %c0_i32_0 : i32, i32
  }
  func.func @transform_7(%arg0: i32) -> (i32, i32) {
    %c0_i32 = arith.constant 0 : i32
    %c0_i32_0 = arith.constant 0 : i32
    return %arg0, %c0_i32 : i32, i32
  }
}

module attributes {stable_mosaic.version = 11 : i64} {
  func.func @_mlp_kernel(%arg0: i32, %arg1: memref<8x16xbf16, #tpu.memory_space<vmem>>, %arg2: memref<16x128xbf16, #tpu.memory_space<vmem>>, %arg3: memref<1x128xf32, #tpu.memory_space<vmem>>, %arg4: memref<128x128xbf16, #tpu.memory_space<vmem>>, %arg5: memref<1x128xf32, #tpu.memory_space<vmem>>, %arg6: memref<128x128xbf16, #tpu.memory_space<vmem>>, %arg7: memref<1x128xf32, #tpu.memory_space<vmem>>, %arg8: memref<8x128xbf16, #tpu.memory_space<vmem>>) attributes {dimension_semantics = [#tpu.dimension_semantics<parallel>], iteration_bounds = array<i64: 1>, scalar_prefetch = 0 : i64, scratch_operands = 0 : i64, tpu.core_type = #tpu.core_type<tc>, window_params = [{transform_indices = @transform_0, window_bounds = array<i64: 8, 16>}, {pipeline_mode = #tpu.pipeline_mode<synchronous>, transform_indices = @transform_1, window_bounds = array<i64: 16, 128>}, {pipeline_mode = #tpu.pipeline_mode<synchronous>, transform_indices = @transform_2, window_bounds = array<i64: 1, 128>}, {pipeline_mode = #tpu.pipeline_mode<synchronous>, transform_indices = @transform_3, window_bounds = array<i64: 128, 128>}, {pipeline_mode = #tpu.pipeline_mode<synchronous>, transform_indices = @transform_4, window_bounds = array<i64: 1, 128>}, {pipeline_mode = #tpu.pipeline_mode<synchronous>, transform_indices = @transform_5, window_bounds = array<i64: 128, 128>}, {pipeline_mode = #tpu.pipeline_mode<synchronous>, transform_indices = @transform_6, window_bounds = array<i64: 1, 128>}, {transform_indices = @transform_7, window_bounds = array<i64: 8, 128>}]} {
    %c0 = arith.constant 0 : index
    %c0_0 = arith.constant 0 : index
    %0 = vector.load %arg1[%c0, %c0_0] : memref<8x16xbf16, #tpu.memory_space<vmem>>, vector<8x16xbf16>
    %c0_1 = arith.constant 0 : index
    %c0_2 = arith.constant 0 : index
    %1 = vector.load %arg2[%c0_1, %c0_2] : memref<16x128xbf16, #tpu.memory_space<vmem>>, vector<16x128xbf16>
    %cst = arith.constant dense<0.000000e+00> : vector<8x128xf32>
    %2 = tpu.matmul %0, %1, %cst {dimension_numbers = #tpu.dot_dimension_numbers<[1], [0], [0], [1], [0, 0, 1, 1], [], []>} : vector<8x16xbf16>, vector<16x128xbf16>, vector<8x128xf32> -> vector<8x128xf32>
    %c0_3 = arith.constant 0 : index
    %c0_4 = arith.constant 0 : index
    %3 = vector.load %arg3[%c0_3, %c0_4] : memref<1x128xf32, #tpu.memory_space<vmem>>, vector<1x128xf32>
    %4 = vector.broadcast %3 : vector<1x128xf32> to vector<8x128xf32>
    %5 = arith.addf %2, %4 : vector<8x128xf32>
    %cst_5 = arith.constant 0.000000e+00 : f32
    %6 = vector.broadcast %cst_5 : f32 to vector<8x128xf32>
    %7 = arith.maximumf %5, %6 : vector<8x128xf32>
    %8 = arith.truncf %7 : vector<8x128xf32> to vector<8x128xbf16>
    %c0_6 = arith.constant 0 : index
    %c0_7 = arith.constant 0 : index
    %9 = vector.load %arg4[%c0_6, %c0_7] : memref<128x128xbf16, #tpu.memory_space<vmem>>, vector<128x128xbf16>
    %cst_8 = arith.constant dense<0.000000e+00> : vector<8x128xf32>
    %10 = tpu.matmul %8, %9, %cst_8 {dimension_numbers = #tpu.dot_dimension_numbers<[1], [0], [0], [1], [0, 0, 1, 1], [], []>} : vector<8x128xbf16>, vector<128x128xbf16>, vector<8x128xf32> -> vector<8x128xf32>
    %c0_9 = arith.constant 0 : index
    %c0_10 = arith.constant 0 : index
    %11 = vector.load %arg5[%c0_9, %c0_10] : memref<1x128xf32, #tpu.memory_space<vmem>>, vector<1x128xf32>
    %12 = vector.broadcast %11 : vector<1x128xf32> to vector<8x128xf32>
    %13 = arith.addf %10, %12 : vector<8x128xf32>
    %cst_11 = arith.constant 0.000000e+00 : f32
    %14 = vector.broadcast %cst_11 : f32 to vector<8x128xf32>
    %15 = arith.maximumf %13, %14 : vector<8x128xf32>
    %16 = arith.truncf %15 : vector<8x128xf32> to vector<8x128xbf16>
    %c0_12 = arith.constant 0 : index
    %c0_13 = arith.constant 0 : index
    %17 = vector.load %arg6[%c0_12, %c0_13] : memref<128x128xbf16, #tpu.memory_space<vmem>>, vector<128x128xbf16>
    %cst_14 = arith.constant dense<0.000000e+00> : vector<8x128xf32>
    %18 = tpu.matmul %16, %17, %cst_14 {dimension_numbers = #tpu.dot_dimension_numbers<[1], [0], [0], [1], [0, 0, 1, 1], [], []>} : vector<8x128xbf16>, vector<128x128xbf16>, vector<8x128xf32> -> vector<8x128xf32>
    %c0_15 = arith.constant 0 : index
    %c0_16 = arith.constant 0 : index
    %19 = vector.load %arg7[%c0_15, %c0_16] : memref<1x128xf32, #tpu.memory_space<vmem>>, vector<1x128xf32>
    %20 = vector.broadcast %19 : vector<1x128xf32> to vector<8x128xf32>
    %21 = arith.addf %18, %20 : vector<8x128xf32>
    %22 = arith.negf %21 : vector<8x128xf32>
    %23 = math.exp %22 : vector<8x128xf32>
    %cst_17 = arith.constant 1.000000e+00 : f32
    %24 = vector.broadcast %cst_17 : f32 to vector<8x128xf32>
    %25 = arith.addf %24, %23 : vector<8x128xf32>
    %26 = arith.divf %24, %25 : vector<8x128xf32>
    %27 = arith.truncf %26 : vector<8x128xf32> to vector<8x128xbf16>
    %c0_18 = arith.constant 0 : index
    %c0_19 = arith.constant 0 : index
    %28 = vector.load %arg8[%c0_18, %c0_19] : memref<8x128xbf16, #tpu.memory_space<vmem>>, vector<8x128xbf16>
    tpu.vector_store %arg8[%c0_18, %c0_19], %27 {strides = array<i32>} : memref<8x128xbf16, #tpu.memory_space<vmem>>, vector<8x128xbf16>,
    return
  }
  func.func @transform_0(%arg0: i32) -> (i32, i32) {
    %c0_i32 = arith.constant 0 : i32
    %c0_i32_0 = arith.constant 0 : i32
    return %arg0, %c0_i32 : i32, i32
  }
  func.func @transform_1(%arg0: i32) -> (i32, i32) {
    %c0_i32 = arith.constant 0 : i32
    %c0_i32_0 = arith.constant 0 : i32
    %c0_i32_1 = arith.constant 0 : i32
    return %c0_i32, %c0_i32_0 : i32, i32
  }
  func.func @transform_2(%arg0: i32) -> (i32, i32) {
    %c0_i32 = arith.constant 0 : i32
    %c0_i32_0 = arith.constant 0 : i32
    %c0_i32_1 = arith.constant 0 : i32
    return %c0_i32, %c0_i32_0 : i32, i32
  }
  func.func @transform_3(%arg0: i32) -> (i32, i32) {
    %c0_i32 = arith.constant 0 : i32
    %c0_i32_0 = arith.constant 0 : i32
    %c0_i32_1 = arith.constant 0 : i32
    return %c0_i32, %c0_i32_0 : i32, i32
  }
  func.func @transform_4(%arg0: i32) -> (i32, i32) {
    %c0_i32 = arith.constant 0 : i32
    %c0_i32_0 = arith.constant 0 : i32
    %c0_i32_1 = arith.constant 0 : i32
    return %c0_i32, %c0_i32_0 : i32, i32
  }
  func.func @transform_5(%arg0: i32) -> (i32, i32) {
    %c0_i32 = arith.constant 0 : i32
    %c0_i32_0 = arith.constant 0 : i32
    %c0_i32_1 = arith.constant 0 : i32
    return %c0_i32, %c0_i32_0 : i32, i32
  }
  func.func @transform_6(%arg0: i32) -> (i32, i32) {
    %c0_i32 = arith.constant 0 : i32
    %c0_i32_0 = arith.constant 0 : i32
    %c0_i32_1 = arith.constant 0 : i32
    return %c0_i32, %c0_i32_0 : i32, i32
  }
  func.func @transform_7(%arg0: i32) -> (i32, i32) {
    %c0_i32 = arith.constant 0 : i32
    %c0_i32_0 = arith.constant 0 : i32
    return %arg0, %c0_i32 : i32, i32
  }
}

</mosaic_0001>

<bundles_post_ra>
// kernel: tpu_custom_call.1
= control target key start
LH: loop header
LB: loop body
LE: loop exit
PB: predicated region body
PF: predicated region fallthrough
CT: control target
= control target key end

     0   :  { %12 = vsyncpa [#allocation3], 0  ;;  %s625_s0 = inlined_call_operand.hbm [shape: bf16[8,16], index: 0, kind: input, shape index: {}]   ;;  %s626_s1 = inlined_call_operand.hbm [shape: bf16[16,128], index: 1, kind: input, shape index: {}]   ;;  %s627_s2 = inlined_call_operand.vmem [shape: f32[1,128], index: 2, kind: input, shape index: {}]   ;;  %s628_s3 = inlined_call_operand.hbm [shape: bf16[128,128], index: 3, kind: input, shape index: {}]   ;;  %s629_s4 = inlined_call_operand.vmem [shape: f32[1,128], index: 4, kind: input, shape index: {}]   ;;  %s630_s5 = inlined_call_operand.hbm [shape: bf16[128,128], index: 5, kind: input, shape index: {}]   ;;  %s631_s6 = inlined_call_operand.vmem [shape: f32[1,128], index: 6, kind: input, shape index: {}]   ;;  %s632_s7 = inlined_call_operand.hbm [shape: bf16[8,128], index: 7, kind: output, shape index: {}]  }
   0x1   :  { %13 = vsyncpa [#allocation6], 0 }
   0x2   :  { %14 = vsyncpa [#allocation9], 0  ;;  %s31_s26 = sshll.u32 %s626_s1, 4  ;;  %s32_s26 = int_to_ptr.hbm [resolvable:$true] %s31_s26 }
   0x3   :  { %15 = vsyncpa [#allocation4], 0  ;;  %s554_s27 = smov [#allocation5]   ;;  %s21_s8 = sshll.u32 %s625_s0, 4  ;;  %s22_s8 = int_to_ptr.hbm [resolvable:$true] %s21_s8 }
   0x4   :  { %s33_s28 = sshll.u32 %s554_s27, 4  ;;  %s555_s9 = smov 64   ;;  %s34_s28 = int_to_ptr.vmem [resolvable:$true] %s33_s28 }
   0x5   :  { %s556_s10 = smov 4   ;;  %s557_s11 = smov [#allocation2]  }
   0x6   :  { %39 = dma.hbm_to_vmem [thread:$0]  %s32_s26, 128, %s34_s28, [#allocation6], %s555_s9, %s555_s9, %s556_s10  }
   0x7   :  { %s23_s12 = sshll.u32 %s557_s11, 4  ;;  %s46_s15 = sshll.u32 %s628_s3, 4  ;;  %s24_s12 = int_to_ptr.vmem [resolvable:$true] %s23_s12  ;;  %s47_s15 = int_to_ptr.hbm [resolvable:$true] %s46_s15 }
   0x8   :  { %26 = dma.hbm_to_vmem [thread:$0]  %s22_s8, 64, %s24_s12, [#allocation3]  }
   0x9   :  { %s61_s17 = sshll.u32 %s630_s5, 4  ;;  %s558_s18 = smov [#allocation7]   ;;  %s62_s17 = int_to_ptr.hbm [resolvable:$true] %s61_s17 }
   0xa   :  { %s48_s19 = sshll.u32 %s558_s18, 4  ;;  %s559_s0 = smov [#allocation8]   ;;  %s49_s19 = int_to_ptr.vmem [resolvable:$true] %s48_s19 }
   0xb   :  { %54 = dma.hbm_to_vmem [thread:$0]  %s47_s15, 1024, %s49_s19, [#allocation6], %s555_s9, %s555_s9, %s556_s10  }
   0xc   :  { %s63_s20 = sshll.u32 %s559_s0, 4  ;;  %s64_s20 = int_to_ptr.vmem [resolvable:$true] %s63_s20 }
   0xd   :  { %69 = dma.hbm_to_vmem [thread:$0]  %s62_s17, 1024, %s64_s20, [#allocation9], %s555_s9, %s555_s9, %s556_s10  }
   0xe   :  { %546 = dma.done.wait [#allocation3], 64  }
   0xf   :  { %547 = vsyncadd [#allocation3], 4294967232 }
  0x10   :  { %548 = dma.done.wait [#allocation6], 1152  }
  0x11   :  { %549 = vsyncadd [#allocation6], 4294966144 }
  0x12   :  { %550 = dma.done.wait [#allocation9], 1024  }
  0x13   :  { %551 = vsyncadd [#allocation9], 4294966272  ;;  %v395_v0 = vld [vmem:[#allocation5] sm:$0xff]  ;;  %v89_v2 = vld [vmem:[#allocation2] sm:$0xf]  ;;  %vm102_vm0 = vcmask 130048  }
  0x14   :  { %v403_v1 = vld [vmem:[#allocation7 + $0x38] sm:$0xff]  ;;  %113 = vmatpush.bf16.msra.mxu0 %v395_v0  ;;  %v402_v3 = vld [vmem:[#allocation7 + $0x30] sm:$0xff]  ;;  %v401_v4 = vld [vmem:[#allocation7 + $0x28] sm:$0xff]  ;;  %s313_s26 = sshll.u32 %s632_s7, 4  ;;  %s314_s26 = int_to_ptr.hbm [resolvable:$true] %s313_s26 }
  0x15   :  { %189 = vmatpush.bf16.msra.mxu1 %v403_v1  ;;  %v400_v5 = vld [vmem:[#allocation7 + $0x20] sm:$0xff]  ;;  %v399_v6 = vld [vmem:[#allocation7 + $0x18] sm:$0xff]  ;;  %v398_v7 = vld [vmem:[#allocation7 + $0x10] sm:$0xff] }
  0x16   :  { %v397_v8 = vld [vmem:[#allocation7 + $0x8] sm:$0xff]  ;;  %v396_v9 = vld [vmem:[#allocation7] sm:$0xff]  ;;  %v411_v10 = vld [vmem:[#allocation8 + $0x38] sm:$0xff] }
  0x17   :  { %329 = vmatmul.msk.bf16.vlgmr.msra.gmra.mxu0 %vm102_vm0, %v89_v2  ;;  %272 = vmatpush.bf16.msra.mxu2 %v411_v10  ;;  %v410_v11 = vld [vmem:[#allocation8 + $0x30] sm:$0xff]  ;;  %v409_v12 = vld [vmem:[#allocation8 + $0x28] sm:$0xff]  ;;  %v408_v13 = vld [vmem:[#allocation8 + $0x20] sm:$0xff] }
  0x18   :  { %v407_v14 = vld [vmem:[#allocation8 + $0x18] sm:$0xff]  ;;  %v406_v15 = vld [vmem:[#allocation8 + $0x10] sm:$0xff]  ;;  %v405_v22 = vld [vmem:[#allocation8 + $0x8] sm:$0xff] }
  0x19   :  { %190 = vmatpush.bf16.msra.mxu1 %v402_v3  ;;  %v419_v16 = vld [vmem:[%s627_s2] ss:$0 sm:$0xff]  ;;  %v404_v23 = vld [vmem:[#allocation8] sm:$0xff] }
  0x1a   :  { %v420_v24 = vld [vmem:[%s629_s4] ss:$0 sm:$0xff]  ;;  %s560_s4 = smov [#allocation10]  }
  0x1b   :  { %273 = vmatpush.bf16.msra.mxu2 %v410_v11  ;;  %v421_v30 = vld [vmem:[%s631_s6] ss:$0 sm:$0xff]  ;;  %s311_s6 = sshll.u32 %s560_s4, 4  ;;  %s312_s6 = int_to_ptr.vmem [resolvable:$true] %s311_s6 }
  0x1d   :  { %191 = vmatpush.bf16.msra.mxu1 %v401_v4 }
  0x1f   :  { %274 = vmatpush.bf16.msra.mxu2 %v409_v12 }
  0x21   :  { %192 = vmatpush.bf16.msra.mxu1 %v400_v5 }
  0x23   :  { %275 = vmatpush.bf16.msra.mxu2 %v408_v13 }
  0x25   :  { %193 = vmatpush.bf16.msra.mxu1 %v399_v6 }
  0x27   :  { %276 = vmatpush.bf16.msra.mxu2 %v407_v14 }
  0x29   :  { %194 = vmatpush.bf16.msra.mxu1 %v398_v7 }
  0x2b   :  { %277 = vmatpush.bf16.msra.mxu2 %v406_v15 }
  0x2d   :  { %195 = vmatpush.bf16.msra.mxu1 %v397_v8 }
  0x2f   :  { %278 = vmatpush.bf16.msra.mxu2 %v405_v22 }
  0x31   :  { %196 = vmatpush.bf16.msra.mxu1 %v396_v9 }
  0x33   :  { %279 = vmatpush.bf16.msra.mxu2 %v404_v23 }
  0x94   :  { %v115_v17 = vpop.f32.mrf.mxu0 }
  0x95   :  { %v116_v18 = vadd.f32 %v419_v16, %v115_v17 }
  0x97   :  { %v119_v19 = vmax.f32 %v116_v18, 0.0 }
  0x99   :  { %v120_v20 = vpack.c.bf16 %v119_v19, %v119_v19 }
  0x9b   :  { %197 = vmatmul.bf16.vlgmr.msra.gmra.mxu1 %v120_v20 }
  0x9c   :  { %v117_v21 = vpop.f32.mrf.mxu0 }
 0x118   :  { %v198_v25 = vpop.f32.mrf.mxu1 }
 0x119   :  { %v199_v26 = vadd.f32 %v420_v24, %v198_v25 }
 0x11b   :  { %v202_v27 = vmax.f32 %v199_v26, 0.0 }
 0x11d   :  { %v203_v28 = vpack.c.bf16 %v202_v27, %v202_v27 }
 0x11f   :  { %280 = vmatmul.bf16.vlgmr.msra.gmra.mxu2 %v203_v28 }
 0x120   :  { %v200_v29 = vpop.f32.mrf.mxu1 }
 0x1a2   :  { %v281_v31 = vpop.f32.mrf.mxu2 }
 0x1a3   :  { %v282_v32 = vadd.f32 %v421_v30, %v281_v31 }
 0x1a5   :  { %v394_v33 = vmul.f32 -1.442695, %v282_v32 }
 0x1a7   :  { %422 = vpow2.f32 %v394_v33 }
 0x1aa   :  { %v283_v34 = vpop.f32.mrf.mxu2 }
 0x1ad   :  { %v423_v35 = vpop.eup %422 }
 0x1ae   :  { %v288_v36 = vadd.f32 1.0, %v423_v35 }
 0x1b0   :  { %424 = vrcp.f32 %v288_v36  ;;  %v300_v40 = vand.u32 2147483648, %v288_v36  ;;  %v298_v42 = vand.u32 2147483647, %v288_v36  ;;  %vm294_vm2 = vweird.f32 %v288_v36 }
 0x1b2   :  { %v301_v44 = vor.u32 1.1754944e-38, %v300_v40  ;;  %vm299_vm4 = vcmp.eq.f32.partialorder %v298_v42, 8.507059e+37 }
 0x1b6   :  { %v425_v37 = vpop.eup %424 }
 0x1b7   :  { %v290_v38 = vmul.f32 %v425_v37, %v288_v36  ;;  %vm295_vm1 = vweird.f32 %v425_v37 }
 0x1b8   :  { %vm296_vm3 = vmor %vm294_vm2, %vm295_vm1 }
 0x1b9   :  { %v291_v39 = vsub.f32 1.0, %v290_v38 }
 0x1bb   :  { %v292_v41 = vmul.f32 %v425_v37, %v291_v39 }
 0x1bd   :  { %v293_v43 = vadd.f32 %v425_v37, %v292_v41 }
 0x1bf   :  { %v297_v45 = vsel %vm296_vm3, %v425_v37, %v293_v43 }
 0x1c0   :  { %v302_v46 = vsel %vm299_vm4, %v301_v44, %v297_v45 }
 0x1c1   :  { %v304_v47 = vpack.c.bf16 %v302_v46, %v302_v46 }
 0x1c3   :  { %305 = vst [vmem:[#allocation10] sm:$0xf] %v304_v47 }
 0x1c4   :  { %316 = dma.vmem_to_hbm [thread:$0]  %s312_s6, 64, %s314_s26, [#allocation4]  }
 0x1c5   :  { %552 = dma.done.wait [#allocation4], 64  }
 0x1c6   :  { %553 = vsyncadd [#allocation4], 4294967232 }
 0x1c7   :  { %321 = vsyncpa [#allocation3], 1 }
 0x1c8   :  { %322 = vsyncpa [#allocation6], 1 }
 0x1c9   :  { %323 = vsyncpa [#allocation9], 1 }
 0x1ca   :  { %324 = vsyncpa [#allocation4], 1 }

// kernel: tpu_custom_call.1
= control target key start
LH: loop header
LB: loop body
LE: loop exit
PB: predicated region body
PF: predicated region fallthrough
CT: control target
= control target key end

     0   :  { %12 = vsyncpa [#allocation3], 0  ;;  %s625_s0 = inlined_call_operand.hbm [shape: bf16[8,16], index: 0, kind: input, shape index: {}]   ;;  %s626_s1 = inlined_call_operand.hbm [shape: bf16[16,128], index: 1, kind: input, shape index: {}]   ;;  %s627_s2 = inlined_call_operand.vmem [shape: f32[1,128], index: 2, kind: input, shape index: {}]   ;;  %s628_s3 = inlined_call_operand.hbm [shape: bf16[128,128], index: 3, kind: input, shape index: {}]   ;;  %s629_s4 = inlined_call_operand.vmem [shape: f32[1,128], index: 4, kind: input, shape index: {}]   ;;  %s630_s5 = inlined_call_operand.hbm [shape: bf16[128,128], index: 5, kind: input, shape index: {}]   ;;  %s631_s6 = inlined_call_operand.vmem [shape: f32[1,128], index: 6, kind: input, shape index: {}]   ;;  %s632_s7 = inlined_call_operand.hbm [shape: bf16[8,128], index: 7, kind: output, shape index: {}]  }
   0x1   :  { %13 = vsyncpa [#allocation6], 0 }
   0x2   :  { %14 = vsyncpa [#allocation9], 0  ;;  %s31_s26 = sshll.u32 %s626_s1, 4  ;;  %s32_s26 = int_to_ptr.hbm [resolvable:$true] %s31_s26 }
   0x3   :  { %15 = vsyncpa [#allocation4], 0  ;;  %s554_s27 = smov [#allocation5]   ;;  %s21_s8 = sshll.u32 %s625_s0, 4  ;;  %s22_s8 = int_to_ptr.hbm [resolvable:$true] %s21_s8 }
   0x4   :  { %s33_s28 = sshll.u32 %s554_s27, 4  ;;  %s555_s9 = smov 64   ;;  %s34_s28 = int_to_ptr.vmem [resolvable:$true] %s33_s28 }
   0x5   :  { %s556_s10 = smov 4   ;;  %s557_s11 = smov [#allocation2]  }
   0x6   :  { %39 = dma.hbm_to_vmem [thread:$0]  %s32_s26, 128, %s34_s28, [#allocation6], %s555_s9, %s555_s9, %s556_s10  }
   0x7   :  { %s23_s12 = sshll.u32 %s557_s11, 4  ;;  %s46_s15 = sshll.u32 %s628_s3, 4  ;;  %s24_s12 = int_to_ptr.vmem [resolvable:$true] %s23_s12  ;;  %s47_s15 = int_to_ptr.hbm [resolvable:$true] %s46_s15 }
   0x8   :  { %26 = dma.hbm_to_vmem [thread:$0]  %s22_s8, 64, %s24_s12, [#allocation3]  }
   0x9   :  { %s61_s17 = sshll.u32 %s630_s5, 4  ;;  %s558_s18 = smov [#allocation7]   ;;  %s62_s17 = int_to_ptr.hbm [resolvable:$true] %s61_s17 }
   0xa   :  { %s48_s19 = sshll.u32 %s558_s18, 4  ;;  %s559_s0 = smov [#allocation8]   ;;  %s49_s19 = int_to_ptr.vmem [resolvable:$true] %s48_s19 }
   0xb   :  { %54 = dma.hbm_to_vmem [thread:$0]  %s47_s15, 1024, %s49_s19, [#allocation6], %s555_s9, %s555_s9, %s556_s10  }
   0xc   :  { %s63_s20 = sshll.u32 %s559_s0, 4  ;;  %s64_s20 = int_to_ptr.vmem [resolvable:$true] %s63_s20 }
   0xd   :  { %69 = dma.hbm_to_vmem [thread:$0]  %s62_s17, 1024, %s64_s20, [#allocation9], %s555_s9, %s555_s9, %s556_s10  }
   0xe   :  { %546 = dma.done.wait [#allocation3], 64  }
   0xf   :  { %547 = vsyncadd [#allocation3], 4294967232 }
  0x10   :  { %548 = dma.done.wait [#allocation6], 1152  }
  0x11   :  { %549 = vsyncadd [#allocation6], 4294966144 }
  0x12   :  { %550 = dma.done.wait [#allocation9], 1024  }
  0x13   :  { %551 = vsyncadd [#allocation9], 4294966272  ;;  %v395_v0 = vld [vmem:[#allocation5] sm:$0xff]  ;;  %v89_v2 = vld [vmem:[#allocation2] sm:$0xf]  ;;  %vm102_vm0 = vcmask 130048  }
  0x14   :  { %v403_v1 = vld [vmem:[#allocation7 + $0x38] sm:$0xff]  ;;  %113 = vmatpush.bf16.msra.mxu0 %v395_v0  ;;  %v402_v3 = vld [vmem:[#allocation7 + $0x30] sm:$0xff]  ;;  %v401_v4 = vld [vmem:[#allocation7 + $0x28] sm:$0xff]  ;;  %s313_s26 = sshll.u32 %s632_s7, 4  ;;  %s314_s26 = int_to_ptr.hbm [resolvable:$true] %s313_s26 }
  0x15   :  { %189 = vmatpush.bf16.msra.mxu1 %v403_v1  ;;  %v400_v5 = vld [vmem:[#allocation7 + $0x20] sm:$0xff]  ;;  %v399_v6 = vld [vmem:[#allocation7 + $0x18] sm:$0xff]  ;;  %v398_v7 = vld [vmem:[#allocation7 + $0x10] sm:$0xff] }
  0x16   :  { %v397_v8 = vld [vmem:[#allocation7 + $0x8] sm:$0xff]  ;;  %v396_v9 = vld [vmem:[#allocation7] sm:$0xff]  ;;  %v411_v10 = vld [vmem:[#allocation8 + $0x38] sm:$0xff] }
  0x17   :  { %329 = vmatmul.msk.bf16.vlgmr.msra.gmra.mxu0 %vm102_vm0, %v89_v2  ;;  %272 = vmatpush.bf16.msra.mxu2 %v411_v10  ;;  %v410_v11 = vld [vmem:[#allocation8 + $0x30] sm:$0xff]  ;;  %v409_v12 = vld [vmem:[#allocation8 + $0x28] sm:$0xff]  ;;  %v408_v13 = vld [vmem:[#allocation8 + $0x20] sm:$0xff] }
  0x18   :  { %v407_v14 = vld [vmem:[#allocation8 + $0x18] sm:$0xff]  ;;  %v406_v15 = vld [vmem:[#allocation8 + $0x10] sm:$0xff]  ;;  %v405_v22 = vld [vmem:[#allocation8 + $0x8] sm:$0xff] }
  0x19   :  { %190 = vmatpush.bf16.msra.mxu1 %v402_v3  ;;  %v419_v16 = vld [vmem:[%s627_s2] ss:$0 sm:$0xff]  ;;  %v404_v23 = vld [vmem:[#allocation8] sm:$0xff] }
  0x1a   :  { %v420_v24 = vld [vmem:[%s629_s4] ss:$0 sm:$0xff]  ;;  %s560_s4 = smov [#allocation10]  }
  0x1b   :  { %273 = vmatpush.bf16.msra.mxu2 %v410_v11  ;;  %v421_v30 = vld [vmem:[%s631_s6] ss:$0 sm:$0xff]  ;;  %s311_s6 = sshll.u32 %s560_s4, 4  ;;  %s312_s6 = int_to_ptr.vmem [resolvable:$true] %s311_s6 }
  0x1d   :  { %191 = vmatpush.bf16.msra.mxu1 %v401_v4 }
  0x1f   :  { %274 = vmatpush.bf16.msra.mxu2 %v409_v12 }
  0x21   :  { %192 = vmatpush.bf16.msra.mxu1 %v400_v5 }
  0x23   :  { %275 = vmatpush.bf16.msra.mxu2 %v408_v13 }
  0x25   :  { %193 = vmatpush.bf16.msra.mxu1 %v399_v6 }
  0x27   :  { %276 = vmatpush.bf16.msra.mxu2 %v407_v14 }
  0x29   :  { %194 = vmatpush.bf16.msra.mxu1 %v398_v7 }
  0x2b   :  { %277 = vmatpush.bf16.msra.mxu2 %v406_v15 }
  0x2d   :  { %195 = vmatpush.bf16.msra.mxu1 %v397_v8 }
  0x2f   :  { %278 = vmatpush.bf16.msra.mxu2 %v405_v22 }
  0x31   :  { %196 = vmatpush.bf16.msra.mxu1 %v396_v9 }
  0x33   :  { %279 = vmatpush.bf16.msra.mxu2 %v404_v23 }
  0x94   :  { %v115_v17 = vpop.f32.mrf.mxu0 }
  0x95   :  { %v116_v18 = vadd.f32 %v419_v16, %v115_v17 }
  0x97   :  { %v119_v19 = vmax.f32 %v116_v18, 0.0 }
  0x99   :  { %v120_v20 = vpack.c.bf16 %v119_v19, %v119_v19 }
  0x9b   :  { %197 = vmatmul.bf16.vlgmr.msra.gmra.mxu1 %v120_v20 }
  0x9c   :  { %v117_v21 = vpop.f32.mrf.mxu0 }
 0x118   :  { %v198_v25 = vpop.f32.mrf.mxu1 }
 0x119   :  { %v199_v26 = vadd.f32 %v420_v24, %v198_v25 }
 0x11b   :  { %v202_v27 = vmax.f32 %v199_v26, 0.0 }
 0x11d   :  { %v203_v28 = vpack.c.bf16 %v202_v27, %v202_v27 }
 0x11f   :  { %280 = vmatmul.bf16.vlgmr.msra.gmra.mxu2 %v203_v28 }
 0x120   :  { %v200_v29 = vpop.f32.mrf.mxu1 }
 0x1a2   :  { %v281_v31 = vpop.f32.mrf.mxu2 }
 0x1a3   :  { %v282_v32 = vadd.f32 %v421_v30, %v281_v31 }
 0x1a5   :  { %v394_v33 = vmul.f32 -1.442695, %v282_v32 }
 0x1a7   :  { %422 = vpow2.f32 %v394_v33 }
 0x1aa   :  { %v283_v34 = vpop.f32.mrf.mxu2 }
 0x1ad   :  { %v423_v35 = vpop.eup %422 }
 0x1ae   :  { %v288_v36 = vadd.f32 1.0, %v423_v35 }
 0x1b0   :  { %424 = vrcp.f32 %v288_v36  ;;  %v300_v40 = vand.u32 2147483648, %v288_v36  ;;  %v298_v42 = vand.u32 2147483647, %v288_v36  ;;  %vm294_vm2 = vweird.f32 %v288_v36 }
 0x1b2   :  { %v301_v44 = vor.u32 1.1754944e-38, %v300_v40  ;;  %vm299_vm4 = vcmp.eq.f32.partialorder %v298_v42, 8.507059e+37 }
 0x1b6   :  { %v425_v37 = vpop.eup %424 }
 0x1b7   :  { %v290_v38 = vmul.f32 %v425_v37, %v288_v36  ;;  %vm295_vm1 = vweird.f32 %v425_v37 }
 0x1b8   :  { %vm296_vm3 = vmor %vm294_vm2, %vm295_vm1 }
 0x1b9   :  { %v291_v39 = vsub.f32 1.0, %v290_v38 }
 0x1bb   :  { %v292_v41 = vmul.f32 %v425_v37, %v291_v39 }
 0x1bd   :  { %v293_v43 = vadd.f32 %v425_v37, %v292_v41 }
 0x1bf   :  { %v297_v45 = vsel %vm296_vm3, %v425_v37, %v293_v43 }
 0x1c0   :  { %v302_v46 = vsel %vm299_vm4, %v301_v44, %v297_v45 }
 0x1c1   :  { %v304_v47 = vpack.c.bf16 %v302_v46, %v302_v46 }
 0x1c3   :  { %305 = vst [vmem:[#allocation10] sm:$0xf] %v304_v47 }
 0x1c4   :  { %316 = dma.vmem_to_hbm [thread:$0]  %s312_s6, 64, %s314_s26, [#allocation4]  }
 0x1c5   :  { %552 = dma.done.wait [#allocation4], 64  }
 0x1c6   :  { %553 = vsyncadd [#allocation4], 4294967232 }
 0x1c7   :  { %321 = vsyncpa [#allocation3], 1 }
 0x1c8   :  { %322 = vsyncpa [#allocation6], 1 }
 0x1c9   :  { %323 = vsyncpa [#allocation9], 1 }
 0x1ca   :  { %324 = vsyncpa [#allocation4], 1 }

</bundles_post_ra>
